<compile_context>
chip_gen: v5e
topology: v5e:2x2
jax: 0.10.0
libtpu: 0.0.40
codegen_flags: <defaults>
</compile_context>

<pallas_src>
import functools

import jax
import jax.numpy as jnp
from jax.experimental import pallas as pl
from jax.experimental.pallas import tpu as pltpu


def _round_up(x, m):
    return ((x + m - 1) // m) * m


def _detr_loss_kernel(num_classes, eos_coef,
                      logits_ref, tgt_ref, sbox_ref, tbox_ref, pvalid_ref,
                      num_ref, den_ref, l1_ref, giou_ref):
    """Fused DETR loss reductions (CE num/den + box L1 / GIoU sums)."""
    split = pl.program_id(0)   # "parallel" split axis (megacore)
    i = pl.program_id(1)       # row-tile index within this split ("arbitrary")

    @pl.when(i == 0)
    def _init():
        # Output blocks are resident across the row-tile axis; zero them once.
        num_ref[...] = jnp.zeros_like(num_ref)
        den_ref[...] = jnp.zeros_like(den_ref)
        l1_ref[...] = jnp.zeros_like(l1_ref)
        giou_ref[...] = jnp.zeros_like(giou_ref)

    # ---- box losses: computed once (split 0, first tile); [4, M] layout so
    #      cx/cy/w/h extraction is a static sublane slice ----
    @pl.when(jnp.logical_and(i == 0, split == 0))
    def _boxes():
        s = sbox_ref[...].astype(jnp.float32)      # [4, M] cx,cy,w,h
        t = tbox_ref[...].astype(jnp.float32)      # [4, M]
        pv = pvalid_ref[...].astype(jnp.float32)   # [1, M] 1.0 = valid pair

        l1 = jnp.sum(jnp.where(pv > 0.0, jnp.abs(s - t), 0.0),
                     axis=(0, 1), keepdims=True)                       # (1, 1)

        def xyxy(b):
            cx, cy, w, h = b[0:1, :], b[1:2, :], b[2:3, :], b[3:4, :]
            return cx - 0.5 * w, cy - 0.5 * h, cx + 0.5 * w, cy + 0.5 * h

        sx0, sy0, sx1, sy1 = xyxy(s)
        tx0, ty0, tx1, ty1 = xyxy(t)
        area_s = (sx1 - sx0) * (sy1 - sy0)
        area_t = (tx1 - tx0) * (ty1 - ty0)
        iw = jnp.maximum(jnp.minimum(sx1, tx1) - jnp.maximum(sx0, tx0), 0.0)
        ih = jnp.maximum(jnp.minimum(sy1, ty1) - jnp.maximum(sy0, ty0), 0.0)
        inter = iw * ih
        union = area_s + area_t - inter
        ew = jnp.maximum(sx1, tx1) - jnp.minimum(sx0, tx0)
        eh = jnp.maximum(sy1, ty1) - jnp.minimum(sy0, ty0)
        area_e = ew * eh
        eps = 1e-12  # numerical guard against degenerate boxes (Inf/NaN otherwise)
        giou = inter / jnp.maximum(union, eps) \
            - (area_e - union) / jnp.maximum(area_e, eps)              # [1, M]
        g = jnp.sum(jnp.where(pv > 0.0, giou, 0.0), axis=1, keepdims=True)

        l1_ref[...] = jnp.broadcast_to(l1, l1_ref.shape)
        giou_ref[...] = jnp.broadcast_to(g, giou_ref.shape)

    # ---- weighted softmax cross-entropy for this row tile ----
    logits = logits_ref[...].astype(jnp.float32)       # [tile_n, C]
    tgt = tgt_ref[...]                                 # [tile_n, 1] int32; -1 = ignore

    m = jnp.max(logits, axis=-1, keepdims=True)
    lse = m + jnp.log(jnp.sum(jnp.exp(logits - m), axis=-1, keepdims=True))
    cls_ids = jax.lax.broadcasted_iota(jnp.int32, logits.shape, 1)
    onehot = (cls_ids == tgt).astype(jnp.float32)
    logit_t = jnp.sum(logits * onehot, axis=-1, keepdims=True)

    # empty_weight == 1 everywhere except eos_coef at class `num_classes`
    w_t = jnp.where(tgt == num_classes, eos_coef, 1.0).astype(jnp.float32)
    w_t = jnp.where(tgt >= 0, w_t, 0.0)                # padding / NaN-batch rows -> 0

    contrib = jnp.where(w_t > 0.0, w_t * (lse - logit_t), 0.0)         # [tile_n, 1]
    num_part = jnp.sum(contrib, axis=0, keepdims=True)                 # (1, 1)
    den_part = jnp.sum(w_t, axis=0, keepdims=True)                     # (1, 1)
    num_ref[...] += jnp.broadcast_to(num_part, num_ref.shape)
    den_ref[...] += jnp.broadcast_to(den_part, den_ref.shape)


def detr_loss_reductions(logits_2d, targets_1d, src_boxes, target_boxes, pair_valid,
                         num_classes, eos_coef, *, max_tile_n=512, num_splits=2):
    """Runs the fused Pallas kernel. Returns (loss_ce, l1_sum, giou_sum)."""
    N, C = logits_2d.shape
    M = src_boxes.shape[0]
    if M == 0:  # degenerate: no matched pairs
        src_boxes = jnp.zeros((1, 4), logits_2d.dtype)
        target_boxes = jnp.zeros((1, 4), logits_2d.dtype)
        pair_valid = jnp.zeros((1,), jnp.float32)
        M = 1

    # Row tiling: TILE_N <= max_tile_n keeps double-buffered logit blocks well
    # under the VMEM scoped limit even on v7x (64 MiB) with large class counts.
    per_split = pl.cdiv(N, num_splits)
    tiles_per_split = pl.cdiv(per_split, max_tile_n)
    tile_n = _round_up(pl.cdiv(per_split, tiles_per_split), 8)
    n_pad = num_splits * tiles_per_split * tile_n

    tgt = targets_1d.astype(jnp.int32)
    if n_pad != N:
        pad = n_pad - N
        logits_2d = jnp.pad(logits_2d, ((0, pad), (0, 0)))
        tgt = jnp.pad(tgt, ((0, pad),), constant_values=-1)
    tgt = tgt.reshape(n_pad, 1)

    sbox_t = src_boxes.T                                  # [4, M]
    tbox_t = target_boxes.T                               # [4, M]
    pv = pair_valid.astype(jnp.float32).reshape(1, M)     # [1, M]

    kernel = functools.partial(_detr_loss_kernel, int(num_classes), float(eos_coef))
    out_sds = jax.ShapeDtypeStruct((num_splits * 8, 128), jnp.float32)
    row_map = lambda c, i: (c * tiles_per_split + i, 0)
    const_map = lambda c, i: (0, 0)
    split_map = lambda c, i: (c, 0)

    num_o, den_o, l1_o, giou_o = pl.pallas_call(
        kernel,
        grid=(num_splits, tiles_per_split),
        in_specs=[
            pl.BlockSpec((tile_n, C), row_map),   # logits: original dtype, cast in-kernel
            pl.BlockSpec((tile_n, 1), row_map),   # targets
            pl.BlockSpec((4, M), const_map),      # src boxes      [4, M]
            pl.BlockSpec((4, M), const_map),      # target boxes   [4, M]
            pl.BlockSpec((1, M), const_map),      # pair validity  [1, M]
        ],
        out_specs=(
            pl.BlockSpec((8, 128), split_map),    # ce numerator (per split)
            pl.BlockSpec((8, 128), split_map),    # ce denominator (per split)
            pl.BlockSpec((8, 128), split_map),    # box L1 sum
            pl.BlockSpec((8, 128), split_map),    # box GIoU sum
        ),
        out_shape=(out_sds, out_sds, out_sds, out_sds),
        compiler_params=pltpu.CompilerParams(
            dimension_semantics=("parallel", "arbitrary")),
    )(logits_2d, tgt, sbox_t, tbox_t, pv)

    ce_num = jnp.sum(num_o[::8, 0])       # per-split partials
    ce_den = jnp.sum(den_o[::8, 0])
    loss_ce = ce_num / ce_den
    # box sums live in split 0's block only
    return loss_ce, l1_o[0, 0], giou_o[0, 0]


def detr_losses_forward(outputs, targets, indices, num_classes, eos_coef=0.1):
    """JAX/Pallas port of DETR_Losses.forward.

    `indices` is the matcher output (list of (src_idx, tgt_idx) per batch);
    the Hungarian matcher itself is an external dependency of the module.
    """
    if len(targets) == 0:
        return None

    pred_logits = outputs["pred_logits"]      # [B, Q, C+1]
    pred_boxes = outputs["pred_boxes"]        # [B, Q, 4]
    B, Q, Cp1 = pred_logits.shape

    # In-graph NaN-batch masking (no host sync, jit-compatible): NaN batches
    # contribute zero to every loss, mirroring the reference's batch filtering.
    # TODO(synk): the reference returns None when *every* batch is NaN; that
    # data-dependent early exit has no in-graph equivalent and is not reproduced.
    batch_ok = ~jnp.isnan(pred_logits).any(axis=(1, 2))                       # [B]

    # get_src_permutation_idx
    batch_idx = jnp.concatenate(
        [jnp.full(src.shape, i, dtype=jnp.int32) for i, (src, _) in enumerate(indices)])
    src_idx = jnp.concatenate([src.astype(jnp.int32) for src, _ in indices])

    # num_boxes = clamp(total target labels over kept batches, min=1)
    lens = jnp.array([t["labels"].shape[0] for t in targets], dtype=jnp.float32)
    num_boxes = jnp.maximum(jnp.sum(lens * batch_ok.astype(jnp.float32)), 1.0)

    # matched box pairs
    src_boxes = pred_boxes[batch_idx, src_idx]                                # [M, 4]
    target_boxes = jnp.concatenate(
        [t["boxes"][tgt] for t, (_, tgt) in zip(targets, indices)], axis=0)   # [M, 4]
    pair_valid = batch_ok[batch_idx].astype(jnp.float32)                      # [M]

    # target classes: "no object" everywhere, matched queries get their label;
    # rows of dropped (NaN) batches get sentinel -1 -> zero CE weight.
    target_classes_o = jnp.concatenate(
        [t["labels"][tgt] for t, (_, tgt) in zip(targets, indices)]).astype(jnp.int32)
    target_classes = jnp.full((B, Q), num_classes, dtype=jnp.int32)
    target_classes = target_classes.at[batch_idx, src_idx].set(target_classes_o)
    target_classes = jnp.where(batch_ok[:, None], target_classes, -1)

    loss_ce, l1_sum, giou_sum = detr_loss_reductions(
        pred_logits.reshape(B * Q, Cp1), target_classes.reshape(B * Q),
        src_boxes, target_boxes, pair_valid, num_classes, eos_coef)

    n_valid_pairs = jnp.maximum(jnp.sum(pair_valid), 1.0)
    loss_bbox = l1_sum / num_boxes
    loss_giou = 1.0 - giou_sum / n_valid_pairs
    return {"loss_bbox": loss_bbox, "loss_giou": loss_giou, "loss_ce": loss_ce}


# ----------------------------------------------------------------------------
# Pure-JAX mirror of the PyTorch module (no-NaN path) used only for validation.
# ----------------------------------------------------------------------------
def _reference_losses(outputs, targets, indices, num_classes, eos_coef):
    pred_logits = outputs["pred_logits"]
    pred_boxes = outputs["pred_boxes"]
    B, Q, Cp1 = pred_logits.shape
    batch_idx = jnp.concatenate(
        [jnp.full(src.shape, i, dtype=jnp.int32) for i, (src, _) in enumerate(indices)])
    src_idx = jnp.concatenate([s for s, _ in indices])
    src_boxes = pred_boxes[batch_idx, src_idx]
    tgt_boxes = jnp.concatenate([t["boxes"][j] for t, (_, j) in zip(targets, indices)], axis=0)
    num_boxes = max(float(sum(int(t["labels"].shape[0]) for t in targets)), 1.0)

    loss_bbox = jnp.abs(src_boxes - tgt_boxes).sum() / num_boxes

    def xyxy(b):
        cx, cy, w, h = b[:, 0], b[:, 1], b[:, 2], b[:, 3]
        return jnp.stack([cx - 0.5 * w, cy - 0.5 * h, cx + 0.5 * w, cy + 0.5 * h], axis=-1)

    sb, tb = xyxy(src_boxes), xyxy(tgt_boxes)
    area_s = (sb[:, 2] - sb[:, 0]) * (sb[:, 3] - sb[:, 1])
    area_t = (tb[:, 2] - tb[:, 0]) * (tb[:, 3] - tb[:, 1])
    lt = jnp.maximum(sb[:, :2], tb[:, :2])
    rb = jnp.minimum(sb[:, 2:], tb[:, 2:])
    wh = jnp.clip(rb - lt, 0.0)
    inter = wh[:, 0] * wh[:, 1]
    union = area_s + area_t - inter
    iou = inter / union
    lt2 = jnp.minimum(sb[:, :2], tb[:, :2])
    rb2 = jnp.maximum(sb[:, 2:], tb[:, 2:])
    wh2 = jnp.clip(rb2 - lt2, 0.0)
    area_e = wh2[:, 0] * wh2[:, 1]
    giou = iou - (area_e - union) / area_e
    loss_giou = 1.0 - giou.mean()

    tc_o = jnp.concatenate([t["labels"][j] for t, (_, j) in zip(targets, indices)]).astype(jnp.int32)
    tc = jnp.full((B, Q), num_classes, jnp.int32).at[batch_idx, src_idx].set(tc_o)
    logits = pred_logits.reshape(B * Q, Cp1).astype(jnp.float32)
    lse = jax.scipy.special.logsumexp(logits, axis=-1)
    picked = jnp.take_along_axis(logits, tc.reshape(-1, 1), axis=-1)[:, 0]
    w = jnp.ones((Cp1,), jnp.float32).at[-1].set(eos_coef)
    wt = w[tc.reshape(-1)]
    loss_ce = jnp.sum(wt * (lse - picked)) / jnp.sum(wt)
    return {"loss_bbox": loss_bbox, "loss_giou": loss_giou, "loss_ce": loss_ce}


if __name__ == "__main__":
    key = jax.random.PRNGKey(0)
    B, Q, num_classes = 2, 8, 4
    Cp1 = num_classes + 1

    k1, k2, k3, k4, k5, k6 = jax.random.split(key, 6)

    pred_logits = jax.random.normal(k1, (B, Q, Cp1), dtype=jnp.float32)
    pred_boxes = jnp.concatenate(
        [jax.random.uniform(k2, (B, Q, 2), minval=0.2, maxval=0.8),
         jax.random.uniform(k3, (B, Q, 2), minval=0.05, maxval=0.3)],
        axis=-1).astype(jnp.float32)
    outputs = {"pred_logits": pred_logits, "pred_boxes": pred_boxes}

    def make_target(kb, kl, n):
        boxes = jnp.concatenate(
            [jax.random.uniform(kb, (n, 2), minval=0.2, maxval=0.8),
             jax.random.uniform(kl, (n, 2), minval=0.05, maxval=0.3)],
            axis=-1).astype(jnp.float32)
        labels = jnp.arange(n, dtype=jnp.int32) % num_classes
        return {"boxes": boxes, "labels": labels}

    targets = [make_target(k4, k5, 3), make_target(k5, k6, 2)]

    # deterministic (synthetic) Hungarian-matcher output: (src_idx, tgt_idx) per batch
    indices = [
        (jnp.array([0, 2, 5], dtype=jnp.int32), jnp.array([1, 0, 2], dtype=jnp.int32)),
        (jnp.array([3, 6], dtype=jnp.int32), jnp.array([1, 0], dtype=jnp.int32)),
    ]

    losses = detr_losses_forward(outputs, targets, indices, num_classes, eos_coef=0.1)
    losses = jax.tree_util.tree_map(jax.block_until_ready, losses)

    ref = _reference_losses(outputs, targets, indices, num_classes, 0.1)
    for name in ("loss_bbox", "loss_giou", "loss_ce"):
        a, b = float(losses[name]), float(ref[name])
        assert abs(a - b) <= 1e-4 + 1e-4 * abs(b), (name, a, b)

    print("KERNEL_OK")
</pallas_src>

<mosaic_0001>
module attributes {stable_mosaic.version = 11 : i64} {
  func.func @_detr_loss_kernel(%arg0: i32, %arg1: i32, %arg2: memref<8x5xf32, #tpu.memory_space<vmem>>, %arg3: memref<8x1xi32, #tpu.memory_space<vmem>>, %arg4: memref<4x5xf32, #tpu.memory_space<vmem>>, %arg5: memref<4x5xf32, #tpu.memory_space<vmem>>, %arg6: memref<1x5xf32, #tpu.memory_space<vmem>>, %arg7: memref<8x128xf32, #tpu.memory_space<vmem>>, %arg8: memref<8x128xf32, #tpu.memory_space<vmem>>, %arg9: memref<8x128xf32, #tpu.memory_space<vmem>>, %arg10: memref<8x128xf32, #tpu.memory_space<vmem>>) attributes {dimension_semantics = [#tpu.dimension_semantics<parallel>, #tpu.dimension_semantics<arbitrary>], iteration_bounds = array<i64: 2, 1>, scalar_prefetch = 0 : i64, scratch_operands = 0 : i64, tpu.core_type = #tpu.core_type<tc>, window_params = [{transform_indices = @transform_0, window_bounds = array<i64: 8, 5>}, {transform_indices = @transform_1, window_bounds = array<i64: 8, 1>}, {pipeline_mode = #tpu.pipeline_mode<synchronous>, transform_indices = @transform_2, window_bounds = array<i64: 4, 5>}, {pipeline_mode = #tpu.pipeline_mode<synchronous>, transform_indices = @transform_3, window_bounds = array<i64: 4, 5>}, {pipeline_mode = #tpu.pipeline_mode<synchronous>, transform_indices = @transform_4, window_bounds = array<i64: 1, 5>}, {transform_indices = @transform_5, window_bounds = array<i64: 8, 128>}, {transform_indices = @transform_6, window_bounds = array<i64: 8, 128>}, {transform_indices = @transform_7, window_bounds = array<i64: 8, 128>}, {transform_indices = @transform_8, window_bounds = array<i64: 8, 128>}]} {
    %c0_i32 = arith.constant 0 : i32
    %0 = arith.cmpi eq, %arg1, %c0_i32 : i32
    %1 = arith.extui %0 : i1 to i32
    %c0_i32_0 = arith.constant 0 : i32
    %2 = arith.cmpi ne, %1, %c0_i32_0 : i32
    scf.if %2 {
      %cst_25 = arith.constant 0.000000e+00 : f32
      %56 = vector.broadcast %cst_25 : f32 to vector<8x128xf32>
      %c0_26 = arith.constant 0 : index
      %c0_27 = arith.constant 0 : index
      %57 = vector.load %arg7[%c0_26, %c0_27] : memref<8x128xf32, #tpu.memory_space<vmem>>, vector<8x128xf32>
      tpu.vector_store %arg7[%c0_26, %c0_27], %56 {strides = array<i32>} : memref<8x128xf32, #tpu.memory_space<vmem>>, vector<8x128xf32>,
      %cst_28 = arith.constant 0.000000e+00 : f32
      %58 = vector.broadcast %cst_28 : f32 to vector<8x128xf32>
      %c0_29 = arith.constant 0 : index
      %c0_30 = arith.constant 0 : index
      %59 = vector.load %arg8[%c0_29, %c0_30] : memref<8x128xf32, #tpu.memory_space<vmem>>, vector<8x128xf32>
      tpu.vector_store %arg8[%c0_29, %c0_30], %58 {strides = array<i32>} : memref<8x128xf32, #tpu.memory_space<vmem>>, vector<8x128xf32>,
      %cst_31 = arith.constant 0.000000e+00 : f32
      %60 = vector.broadcast %cst_31 : f32 to vector<8x128xf32>
      %c0_32 = arith.constant 0 : index
      %c0_33 = arith.constant 0 : index
      %61 = vector.load %arg9[%c0_32, %c0_33] : memref<8x128xf32, #tpu.memory_space<vmem>>, vector<8x128xf32>
      tpu.vector_store %arg9[%c0_32, %c0_33], %60 {strides = array<i32>} : memref<8x128xf32, #tpu.memory_space<vmem>>, vector<8x128xf32>,
      %cst_34 = arith.constant 0.000000e+00 : f32
      %62 = vector.broadcast %cst_34 : f32 to vector<8x128xf32>
      %c0_35 = arith.constant 0 : index
      %c0_36 = arith.constant 0 : index
      %63 = vector.load %arg10[%c0_35, %c0_36] : memref<8x128xf32, #tpu.memory_space<vmem>>, vector<8x128xf32>
      tpu.vector_store %arg10[%c0_35, %c0_36], %62 {strides = array<i32>} : memref<8x128xf32, #tpu.memory_space<vmem>>, vector<8x128xf32>,
    } else {
    }
    %c0_i32_1 = arith.constant 0 : i32
    %3 = arith.cmpi eq, %arg1, %c0_i32_1 : i32
    %c0_i32_2 = arith.constant 0 : i32
    %4 = arith.cmpi eq, %arg0, %c0_i32_2 : i32
    %5 = arith.andi %3, %4 : i1
    %6 = arith.extui %5 : i1 to i32
    %c0_i32_3 = arith.constant 0 : i32
    %7 = arith.cmpi ne, %6, %c0_i32_3 : i32
    scf.if %7 {
      %c0_25 = arith.constant 0 : index
      %c0_26 = arith.constant 0 : index
      %56 = vector.load %arg4[%c0_25, %c0_26] : memref<4x5xf32, #tpu.memory_space<vmem>>, vector<4x5xf32>
      %c0_27 = arith.constant 0 : index
      %c0_28 = arith.constant 0 : index
      %57 = vector.load %arg5[%c0_27, %c0_28] : memref<4x5xf32, #tpu.memory_space<vmem>>, vector<4x5xf32>
      %c0_29 = arith.constant 0 : index
      %c0_30 = arith.constant 0 : index
      %58 = vector.load %arg6[%c0_29, %c0_30] : memref<1x5xf32, #tpu.memory_space<vmem>>, vector<1x5xf32>
      %cst_31 = arith.constant 0.000000e+00 : f32
      %59 = vector.broadcast %cst_31 : f32 to vector<1x5xf32>
      %60 = arith.cmpf ogt, %58, %59 : vector<1x5xf32>
      %61 = arith.subf %56, %57 : vector<4x5xf32>
      %62 = math.absf %61 : vector<4x5xf32>
      %cst_32 = arith.constant 0.000000e+00 : f32
      %63 = vector.shape_cast %60 : vector<1x5xi1> to vector<1x5xi1>
      %64 = vector.broadcast %63 : vector<1x5xi1> to vector<4x5xi1>
      %65 = vector.broadcast %cst_32 : f32 to vector<4x5xf32>
      %66 = arith.select %64, %62, %65 : vector<4x5xi1>, vector<4x5xf32>
      %67 = vector.shape_cast %66 : vector<4x5xf32> to vector<1x4x5xf32>
      %cst_33 = arith.constant dense<0.000000e+00> : vector<1xf32>
      %68 = vector.multi_reduction <add>, %67, %cst_33 [1, 2] : vector<1x4x5xf32> to vector<1xf32>
      %69 = vector.shape_cast %68 : vector<1xf32> to vector<1x1x1xf32>
      %70 = vector.extract %69[0, 0, 0] : f32 from vector<1x1x1xf32>
      %71 = vector.broadcast %70 : f32 to vector<1x1xf32>
      %72 = vector.extract_strided_slice %56 {offsets = [0, 0], sizes = [1, 5], strides = [1, 1]} : vector<4x5xf32> to vector<1x5xf32>
      %73 = vector.extract_strided_slice %56 {offsets = [1, 0], sizes = [1, 5], strides = [1, 1]} : vector<4x5xf32> to vector<1x5xf32>
      %74 = vector.extract_strided_slice %56 {offsets = [2, 0], sizes = [1, 5], strides = [1, 1]} : vector<4x5xf32> to vector<1x5xf32>
      %75 = vector.extract_strided_slice %56 {offsets = [3, 0], sizes = [1, 5], strides = [1, 1]} : vector<4x5xf32> to vector<1x5xf32>
      %cst_34 = arith.constant 5.000000e-01 : f32
      %76 = vector.broadcast %cst_34 : f32 to vector<1x5xf32>
      %77 = arith.mulf %76, %74 : vector<1x5xf32>
      %78 = arith.subf %72, %77 : vector<1x5xf32>
      %cst_35 = arith.constant 5.000000e-01 : f32
      %79 = vector.broadcast %cst_35 : f32 to vector<1x5xf32>
      %80 = arith.mulf %79, %75 : vector<1x5xf32>
      %81 = arith.subf %73, %80 : vector<1x5xf32>
      %cst_36 = arith.constant 5.000000e-01 : f32
      %82 = vector.broadcast %cst_36 : f32 to vector<1x5xf32>
      %83 = arith.mulf %82, %74 : vector<1x5xf32>
      %84 = arith.addf %72, %83 : vector<1x5xf32>
      %cst_37 = arith.constant 5.000000e-01 : f32
      %85 = vector.broadcast %cst_37 : f32 to vector<1x5xf32>
      %86 = arith.mulf %85, %75 : vector<1x5xf32>
      %87 = arith.addf %73, %86 : vector<1x5xf32>
      %88 = vector.extract_strided_slice %57 {offsets = [0, 0], sizes = [1, 5], strides = [1, 1]} : vector<4x5xf32> to vector<1x5xf32>
      %89 = vector.extract_strided_slice %57 {offsets = [1, 0], sizes = [1, 5], strides = [1, 1]} : vector<4x5xf32> to vector<1x5xf32>
      %90 = vector.extract_strided_slice %57 {offsets = [2, 0], sizes = [1, 5], strides = [1, 1]} : vector<4x5xf32> to vector<1x5xf32>
      %91 = vector.extract_strided_slice %57 {offsets = [3, 0], sizes = [1, 5], strides = [1, 1]} : vector<4x5xf32> to vector<1x5xf32>
      %cst_38 = arith.constant 5.000000e-01 : f32
      %92 = vector.broadcast %cst_38 : f32 to vector<1x5xf32>
      %93 = arith.mulf %92, %90 : vector<1x5xf32>
      %94 = arith.subf %88, %93 : vector<1x5xf32>
      %cst_39 = arith.constant 5.000000e-01 : f32
      %95 = vector.broadcast %cst_39 : f32 to vector<1x5xf32>
      %96 = arith.mulf %95, %91 : vector<1x5xf32>
      %97 = arith.subf %89, %96 : vector<1x5xf32>
      %cst_40 = arith.constant 5.000000e-01 : f32
      %98 = vector.broadcast %cst_40 : f32 to vector<1x5xf32>
      %99 = arith.mulf %98, %90 : vector<1x5xf32>
      %100 = arith.addf %88, %99 : vector<1x5xf32>
      %cst_41 = arith.constant 5.000000e-01 : f32
      %101 = vector.broadcast %cst_41 : f32 to vector<1x5xf32>
      %102 = arith.mulf %101, %91 : vector<1x5xf32>
      %103 = arith.addf %89, %102 : vector<1x5xf32>
      %104 = arith.subf %84, %78 : vector<1x5xf32>
      %105 = arith.subf %87, %81 : vector<1x5xf32>
      %106 = arith.mulf %104, %105 : vector<1x5xf32>
      %107 = arith.subf %100, %94 : vector<1x5xf32>
      %108 = arith.subf %103, %97 : vector<1x5xf32>
      %109 = arith.mulf %107, %108 : vector<1x5xf32>
      %110 = arith.minimumf %84, %100 : vector<1x5xf32>
      %111 = arith.maximumf %78, %94 : vector<1x5xf32>
      %112 = arith.subf %110, %111 : vector<1x5xf32>
      %cst_42 = arith.constant 0.000000e+00 : f32
      %113 = vector.broadcast %cst_42 : f32 to vector<1x5xf32>
      %114 = arith.maximumf %112, %113 : vector<1x5xf32>
      %115 = arith.minimumf %87, %103 : vector<1x5xf32>
      %116 = arith.maximumf %81, %97 : vector<1x5xf32>
      %117 = arith.subf %115, %116 : vector<1x5xf32>
      %cst_43 = arith.constant 0.000000e+00 : f32
      %118 = vector.broadcast %cst_43 : f32 to vector<1x5xf32>
      %119 = arith.maximumf %117, %118 : vector<1x5xf32>
      %120 = arith.mulf %114, %119 : vector<1x5xf32>
      %121 = arith.addf %106, %109 : vector<1x5xf32>
      %122 = arith.subf %121, %120 : vector<1x5xf32>
      %123 = arith.maximumf %84, %100 : vector<1x5xf32>
      %124 = arith.minimumf %78, %94 : vector<1x5xf32>
      %125 = arith.subf %123, %124 : vector<1x5xf32>
      %126 = arith.maximumf %87, %103 : vector<1x5xf32>
      %127 = arith.minimumf %81, %97 : vector<1x5xf32>
      %128 = arith.subf %126, %127 : vector<1x5xf32>
      %129 = arith.mulf %125, %128 : vector<1x5xf32>
      %cst_44 = arith.constant 9.99999996E-13 : f32
      %130 = vector.broadcast %cst_44 : f32 to vector<1x5xf32>
      %131 = arith.maximumf %122, %130 : vector<1x5xf32>
      %132 = arith.divf %120, %131 : vector<1x5xf32>
      %133 = arith.subf %129, %122 : vector<1x5xf32>
      %cst_45 = arith.constant 9.99999996E-13 : f32
      %134 = vector.broadcast %cst_45 : f32 to vector<1x5xf32>
      %135 = arith.maximumf %129, %134 : vector<1x5xf32>
      %136 = arith.divf %133, %135 : vector<1x5xf32>
      %137 = arith.subf %132, %136 : vector<1x5xf32>
      %cst_46 = arith.constant 0.000000e+00 : f32
      %138 = vector.broadcast %cst_46 : f32 to vector<1x5xf32>
      %139 = arith.cmpf ogt, %58, %138 : vector<1x5xf32>
      %cst_47 = arith.constant 0.000000e+00 : f32
      %140 = vector.broadcast %cst_47 : f32 to vector<1x5xf32>
      %141 = arith.select %139, %137, %140 : vector<1x5xi1>, vector<1x5xf32>
      %cst_48 = arith.constant dense<0.000000e+00> : vector<1xf32>
      %142 = vector.multi_reduction <add>, %141, %cst_48 [1] : vector<1x5xf32> to vector<1xf32>
      %143 = vector.shape_cast %142 : vector<1xf32> to vector<1x1xf32>
      %144 = vector.shape_cast %71 : vector<1x1xf32> to vector<1x1xf32>
      %145 = vector.broadcast %144 : vector<1x1xf32> to vector<8x128xf32>
      %c0_49 = arith.constant 0 : index
      %c0_50 = arith.constant 0 : index
      %146 = vector.load %arg9[%c0_49, %c0_50] : memref<8x128xf32, #tpu.memory_space<vmem>>, vector<8x128xf32>
      tpu.vector_store %arg9[%c0_49, %c0_50], %145 {strides = array<i32>} : memref<8x128xf32, #tpu.memory_space<vmem>>, vector<8x128xf32>,
      %147 = vector.shape_cast %143 : vector<1x1xf32> to vector<1x1xf32>
      %148 = vector.broadcast %147 : vector<1x1xf32> to vector<8x128xf32>
      %c0_51 = arith.constant 0 : index
      %c0_52 = arith.constant 0 : index
      %149 = vector.load %arg10[%c0_51, %c0_52] : memref<8x128xf32, #tpu.memory_space<vmem>>, vector<8x128xf32>
      tpu.vector_store %arg10[%c0_51, %c0_52], %148 {strides = array<i32>} : memref<8x128xf32, #tpu.memory_space<vmem>>, vector<8x128xf32>,
    } else {
    }
    %c0 = arith.constant 0 : index
    %c0_4 = arith.constant 0 : index
    %8 = vector.load %arg2[%c0, %c0_4] : memref<8x5xf32, #tpu.memory_space<vmem>>, vector<8x5xf32>
    %c0_5 = arith.constant 0 : index
    %c0_6 = arith.constant 0 : index
    %9 = vector.load %arg3[%c0_5, %c0_6] : memref<8x1xi32, #tpu.memory_space<vmem>>, vector<8x1xi32>
    %cst = arith.constant dense<0xFF800000> : vector<8xf32>
    %10 = vector.multi_reduction <maximumf>, %8, %cst [1] : vector<8x5xf32> to vector<8xf32>
    %11 = vector.shape_cast %10 : vector<8xf32> to vector<8x1xf32>
    %12 = vector.broadcast %11 : vector<8x1xf32> to vector<8x5xf32>
    %13 = arith.subf %8, %12 : vector<8x5xf32>
    %14 = math.exp %13 : vector<8x5xf32>
    %cst_7 = arith.constant dense<0.000000e+00> : vector<8xf32>
    %15 = vector.multi_reduction <add>, %14, %cst_7 [1] : vector<8x5xf32> to vector<8xf32>
    %16 = vector.shape_cast %15 : vector<8xf32> to vector<8x1xf32>
    %17 = math.log %16 : vector<8x1xf32>
    %18 = arith.addf %11, %17 : vector<8x1xf32>
    %19 = tpu.iota {dimensions = array<i32: 1>} : vector<8x5xi32>
    %20 = vector.broadcast %9 : vector<8x1xi32> to vector<8x5xi32>
    %21 = arith.cmpi eq, %19, %20 : vector<8x5xi32>
    %22 = arith.extui %21 : vector<8x5xi1> to vector<8x5xi32>
    %23 = arith.sitofp %22 : vector<8x5xi32> to vector<8x5xf32>
    %24 = arith.mulf %8, %23 : vector<8x5xf32>
    %cst_8 = arith.constant dense<0.000000e+00> : vector<8xf32>
    %25 = vector.multi_reduction <add>, %24, %cst_8 [1] : vector<8x5xf32> to vector<8xf32>
    %26 = vector.shape_cast %25 : vector<8xf32> to vector<8x1xf32>
    %c4_i32 = arith.constant 4 : i32
    %27 = vector.broadcast %c4_i32 : i32 to vector<8x1xi32>
    %28 = arith.cmpi eq, %9, %27 : vector<8x1xi32>
    %cst_9 = arith.constant 1.000000e-01 : f32
    %cst_10 = arith.constant 1.000000e+00 : f32
    %29 = vector.broadcast %cst_9 : f32 to vector<8x1xf32>
    %30 = vector.broadcast %cst_10 : f32 to vector<8x1xf32>
    %31 = arith.select %28, %29, %30 : vector<8x1xi1>, vector<8x1xf32>
    %c0_i32_11 = arith.constant 0 : i32
    %32 = vector.broadcast %c0_i32_11 : i32 to vector<8x1xi32>
    %33 = arith.cmpi sge, %9, %32 : vector<8x1xi32>
    %cst_12 = arith.constant 0.000000e+00 : f32
    %34 = vector.broadcast %cst_12 : f32 to vector<8x1xf32>
    %35 = arith.select %33, %31, %34 : vector<8x1xi1>, vector<8x1xf32>
    %cst_13 = arith.constant 0.000000e+00 : f32
    %36 = vector.broadcast %cst_13 : f32 to vector<8x1xf32>
    %37 = arith.cmpf ogt, %35, %36 : vector<8x1xf32>
    %38 = arith.subf %18, %26 : vector<8x1xf32>
    %39 = arith.mulf %35, %38 : vector<8x1xf32>
    %cst_14 = arith.constant 0.000000e+00 : f32
    %40 = vector.broadcast %cst_14 : f32 to vector<8x1xf32>
    %41 = arith.select %37, %39, %40 : vector<8x1xi1>, vector<8x1xf32>
    %cst_15 = arith.constant dense<0.000000e+00> : vector<1xf32>
    %42 = vector.multi_reduction <add>, %41, %cst_15 [0] : vector<8x1xf32> to vector<1xf32>
    %43 = vector.shape_cast %42 : vector<1xf32> to vector<1x1xf32>
    %cst_16 = arith.constant dense<0.000000e+00> : vector<1xf32>
    %44 = vector.multi_reduction <add>, %35, %cst_16 [0] : vector<8x1xf32> to vector<1xf32>
    %45 = vector.shape_cast %44 : vector<1xf32> to vector<1x1xf32>
    %c0_17 = arith.constant 0 : index
    %c0_18 = arith.constant 0 : index
    %46 = vector.load %arg7[%c0_17, %c0_18] : memref<8x128xf32, #tpu.memory_space<vmem>>, vector<8x128xf32>
    %47 = vector.shape_cast %43 : vector<1x1xf32> to vector<1x1xf32>
    %48 = vector.broadcast %47 : vector<1x1xf32> to vector<8x128xf32>
    %49 = arith.addf %46, %48 : vector<8x128xf32>
    %c0_19 = arith.constant 0 : index
    %c0_20 = arith.constant 0 : index
    %50 = vector.load %arg7[%c0_19, %c0_20] : memref<8x128xf32, #tpu.memory_space<vmem>>, vector<8x128xf32>
    tpu.vector_store %arg7[%c0_19, %c0_20], %49 {strides = array<i32>} : memref<8x128xf32, #tpu.memory_space<vmem>>, vector<8x128xf32>,
    %c0_21 = arith.constant 0 : index
    %c0_22 = arith.constant 0 : index
    %51 = vector.load %arg8[%c0_21, %c0_22] : memref<8x128xf32, #tpu.memory_space<vmem>>, vector<8x128xf32>
    %52 = vector.shape_cast %45 : vector<1x1xf32> to vector<1x1xf32>
    %53 = vector.broadcast %52 : vector<1x1xf32> to vector<8x128xf32>
    %54 = arith.addf %51, %53 : vector<8x128xf32>
    %c0_23 = arith.constant 0 : index
    %c0_24 = arith.constant 0 : index
    %55 = vector.load %arg8[%c0_23, %c0_24] : memref<8x128xf32, #tpu.memory_space<vmem>>, vector<8x128xf32>
    tpu.vector_store %arg8[%c0_23, %c0_24], %54 {strides = array<i32>} : memref<8x128xf32, #tpu.memory_space<vmem>>, vector<8x128xf32>,
    return
  }
  func.func @transform_0(%arg0: i32, %arg1: i32) -> (i32, i32) {
    %c1_i32 = arith.constant 1 : i32
    %0 = arith.muli %arg0, %c1_i32 : i32
    %1 = arith.addi %0, %arg1 : i32
    %c0_i32 = arith.constant 0 : i32
    %c0_i32_0 = arith.constant 0 : i32
    return %1, %c0_i32 : i32, i32
  }
  func.func @transform_1(%arg0: i32, %arg1: i32) -> (i32, i32) {
    %c1_i32 = arith.constant 1 : i32
    %0 = arith.muli %arg0, %c1_i32 : i32
    %1 = arith.addi %0, %arg1 : i32
    %c0_i32 = arith.constant 0 : i32
    %c0_i32_0 = arith.constant 0 : i32
    return %1, %c0_i32 : i32, i32
  }
  func.func @transform_2(%arg0: i32, %arg1: i32) -> (i32, i32) {
    %c0_i32 = arith.constant 0 : i32
    %c0_i32_0 = arith.constant 0 : i32
    %c0_i32_1 = arith.constant 0 : i32
    return %c0_i32, %c0_i32_0 : i32, i32
  }
  func.func @transform_3(%arg0: i32, %arg1: i32) -> (i32, i32) {
    %c0_i32 = arith.constant 0 : i32
    %c0_i32_0 = arith.constant 0 : i32
    %c0_i32_1 = arith.constant 0 : i32
    return %c0_i32, %c0_i32_0 : i32, i32
  }
  func.func @transform_4(%arg0: i32, %arg1: i32) -> (i32, i32) {
    %c0_i32 = arith.constant 0 : i32
    %c0_i32_0 = arith.constant 0 : i32
    %c0_i32_1 = arith.constant 0 : i32
    return %c0_i32, %c0_i32_0 : i32, i32
  }
  func.func @transform_5(%arg0: i32, %arg1: i32) -> (i32, i32) {
    %c0_i32 = arith.constant 0 : i32
    %c0_i32_0 = arith.constant 0 : i32
    return %arg0, %c0_i32 : i32, i32
  }
  func.func @transform_6(%arg0: i32, %arg1: i32) -> (i32, i32) {
    %c0_i32 = arith.constant 0 : i32
    %c0_i32_0 = arith.constant 0 : i32
    return %arg0, %c0_i32 : i32, i32
  }
  func.func @transform_7(%arg0: i32, %arg1: i32) -> (i32, i32) {
    %c0_i32 = arith.constant 0 : i32
    %c0_i32_0 = arith.constant 0 : i32
    return %arg0, %c0_i32 : i32, i32
  }
  func.func @transform_8(%arg0: i32, %arg1: i32) -> (i32, i32) {
    %c0_i32 = arith.constant 0 : i32
    %c0_i32_0 = arith.constant 0 : i32
    return %arg0, %c0_i32 : i32, i32
  }
}

</mosaic_0001>

<bundles_post_ra>
// kernel: tpu_custom_call.1
= control target key start
LH: loop header
LB: loop body
LE: loop exit
PB: predicated region body
PF: predicated region fallthrough
CT: control target
= control target key end

     0   :  { %s1361_s0 = inlined_call_operand.vmem [shape: f32[16,5], index: 0, kind: input, shape index: {}]   ;;  %s1362_s1 = inlined_call_operand.vmem [shape: s32[16,1], index: 1, kind: input, shape index: {}]   ;;  %s1363_s2 = inlined_call_operand.vmem [shape: f32[4,5], index: 2, kind: input, shape index: {}]   ;;  %s1364_s3 = inlined_call_operand.vmem [shape: f32[4,5], index: 3, kind: input, shape index: {}]   ;;  %s1365_s4 = inlined_call_operand.vmem [shape: f32[1,5], index: 4, kind: input, shape index: {}]   ;;  %s1366_s5 = inlined_call_operand.hbm [shape: f32[16,128], index: 5, kind: output, shape index: {0}]   ;;  %s1367_s6 = inlined_call_operand.hbm [shape: f32[16,128], index: 6, kind: output, shape index: {1}]   ;;  %s1368_s7 = inlined_call_operand.hbm [shape: f32[16,128], index: 7, kind: output, shape index: {2}]   ;;  %s1369_s8 = inlined_call_operand.hbm [shape: f32[16,128], index: 8, kind: output, shape index: {3}]  }
   0x1   :  { %1374 = sst [smem:[#allocation15_spill]] %s1361_s0 }
   0x2   :  { %1375 = sst [smem:[#allocation16_spill]] %s1362_s1 }
   0x3   :  { %1376 = sst [smem:[#allocation17_spill]] %s1363_s2 }
   0x4   :  { %14 = vsyncpa [#allocation3], 0 }
   0x5   :  { %16 = vsyncpa [#allocation3 + $0x1], 0 }
   0x6   :  { %17 = vsyncpa [#allocation5], 0 }
   0x7   :  { %19 = vsyncpa [#allocation5 + $0x1], 0 }
   0x8   :  { %20 = vsyncpa [#allocation8], 0 }
   0x9   :  { %22 = vsyncpa [#allocation8 + $0x1], 0  ;;  %s1133_s27 = smov 0   ;;  %s1135_s28 = smov 0  }
   0xa   :  { %s1137_s29 = smov 0   ;;  %s1139_s30 = smov 0  }
   0xb   :  { %s1141_s9 = smov 0   ;;  %s1143_s10 = smov 0  }
   0xc LB: > { %1377 = sst [smem:[#allocation12_spill]] %s1078_s9  ;;  %s1371_s11 = sadd.s32 4294967295, %s1082_s10   ;;  %s1082_s10 = sphi %s1143_s10, %s28_s10   ;;  %s1078_s9 = sphi %s1141_s9, %s1389_s9   ;;  %s1074_s30 = sphi %s1139_s30, %s1388_s30   ;;  %s1070_s29 = sphi %s1137_s29, %s1392_s29   ;;  %s1066_s28 = sphi %s1135_s28, %s1391_s28   ;;  %s1062_s27 = sphi %s1133_s27, %s1390_s27  }
   0xd   : > { %s1370_s12 = sadd.s32 4294967294, %s1082_s10   ;;  %s40_s13 = sadd.s32 1, %s1078_s9 }
   0xe   : > { %s166_s14 = sadd.s32 1, %s1070_s29  ;;  %p42_p0 = scmp.ge.s32.totalorder %s40_s13, 2 }
   0xf   : > { %p176_p1 = scmp.ne.s32.totalorder %s1070_s29, %s1066_s28  ;;  %p177_p2 = scmp.eq.s32.totalorder %s1371_s11, 1 }
  0x10   : > { %p182_p3 = scmp.ne.s32.totalorder %s1066_s28, %s1062_s27  ;;  %s1394_s13 = smov (%p42_p0, %s40_s13), 0 }
  0x11   : > { %1378 = sst [smem:[#allocation13_spill]] %s1394_s13  ;;  %p1175_p4 = por %p177_p2, %p176_p1 }
  0x12   : > { %p183_p5 = scmp.eq.s32.totalorder %s1370_s12, 1  ;;  %s163_s16 = ssub.s32 %s1078_s9, %s1394_s13 }
  0x13   : > { %p806_p6 = scmp.ge.s32.totalorder %s1082_s10, 1  ;;  %p164_p7 = scmp.eq.s32.totalorder %s163_s16, 0 }
  0x14   : > { %p1184_p8 = por %p183_p5, %p182_p3  ;;  %p306_p9 = scmp.lt.s32.totalorder %s1082_s10, 3 }
  0x15   : > { %s1190_s18 = scalar_select %p164_p7, %s1070_s29, %s166_s14  }
  0x16   : > { %p307_p10 = pnand %p806_p6, %p306_p9 }
  0x17   : > { %1381 = sst [smem:[#allocation14_spill]] %s1190_s18  ;;  %s1193_s19 = sand.u32 (!%p307_p10), 1, %s1066_s28  }
  0x18   : > { %310 = sbr.rel (%p307_p10) target bundleno = 595 (0x253), region = 40  ;;  %p361_p11 = scmp.lt.s32.totalorder (!%p307_p10), %s1074_s30, 1 }
  0x19   : > { %s807_s20 = sshll.u32 (!%p307_p10), %s1193_s19, 3  ;;  %p380_p12 = scmp.eq.s32.totalorder (!%p307_p10), %s1074_s30, 0 }
  0x1a   : > { %s1199_s22 = scalar_lea.vmem (!%p307_p10), [#allocation2], %s807_s20  ;;  %s1203_s23 = scalar_lea.vmem (!%p307_p10), [#allocation4], %s807_s20 }
  0x1b   : > { %s1207_s25 = scalar_lea.vmem (!%p307_p10), [#allocation6], %s807_s20  ;;  %s1382_s0 = sld [smem:[#allocation15_spill]] (!%p307_p10) }
  0x1c   : > { %s1383_s1 = sld [smem:[#allocation16_spill]] (!%p307_p10)  ;;  %s1221_s9 = scalar_lea.vmem (!%p307_p10), [#allocation7], %s807_s20 }
  0x1d   : > { %s362_s21 = scalar_select %p361_p11, %s1074_s30, 1  ;;  %v1084_v0 = vmov 0.0   ;;  %v386_v2 = vld [vmem:[%s1364_s3] sm:$0xf] (%p380_p12)  ;;  %v1085_v5 = vmov (%p380_p12), 0   ;;  %vm395_vm1 = vcmask (%p380_p12), 35840  }
  0x1e   : > { %376 = vst [vmem:[%s1199_s22] sm:$0xff] %v1084_v0  ;;  %384 = sbr.rel (!%p380_p12) target bundleno = 223 (0xdf), region = 48  ;;  %s1384_s2 = sld [smem:[#allocation17_spill]] (%p380_p12)  ;;  %v1236_v3 = vld [vmem:[%s1365_s4] sm:$0x1] (%p380_p12)  ;;  %v412_v8 = vmul.f32 (%p380_p12), 0.5, %v386_v2  ;;  %vm480_vm11 = vcmask (%p380_p12), 32768  }
  0x1f   : > { %377 = vst [vmem:[%s1203_s23] sm:$0xff] %v1084_v0  ;;  %s811_s24 = sshll.u32 %s362_s21, 3  ;;  %vm388_vm0 = vcmp.gt.f32.partialorder (%p380_p12), %v1236_v3, 0.0 }
  0x20   : > { %378 = vst [vmem:[%s1207_s25] sm:$0xff] %v1084_v0  ;;  %v391_v6 = vsel (%p380_p12), %vm388_vm0, 1, %v1085_v5  ;;  %v414_v12 = vrot.slane (%p380_p12), %v412_v8, 2 }
  0x21   : > { %s1214_s16 = scalar_lea.vmem %s1382_s0, %s811_s24  ;;  %379 = vst [vmem:[%s1221_s9] sm:$0xff] %v1084_v0  ;;  %v392_v10 = vperm.slane (%p380_p12), %v391_v6, 0 }
  0x22   : > { %s1219_s13 = scalar_lea.vmem %s1383_s1, %s811_s24  ;;  %v416_v16 = vsub.f32 (%p380_p12), %v386_v2, %v414_v12  ;;  %v417_v18 = vadd.f32 (%p380_p12), %v414_v12, %v386_v2 }
  0x23   : > { %vm393_vm2 = vcmp.eq.s32.totalorder %v392_v10, 1 }
  0x24   : > { %v385_v1 = vld [vmem:[%s1384_s2] sm:$0xf]  ;;  %v423_v22 = vsub.f32 %v417_v18, %v416_v16 }
  0x25   : > { %v389_v4 = vsub.f32 %v385_v1, %v386_v2  ;;  %v406_v7 = vmul.f32 0.5, %v385_v1 }
  0x26   : > { %v425_v26 = vrot.slane %v423_v22, 1 }
  0x27   : > { %v390_v9 = vand.u32 2147483647, %v389_v4  ;;  %v408_v11 = vrot.slane %v406_v7, 2 }
  0x28   : > { %v427_v30 = vmul.f32 %v425_v26, %v423_v22 }
  0x29   : > { %v394_v13 = vsel %vm393_vm2, %v390_v9, 0.0  ;;  %v410_v14 = vsub.f32 %v385_v1, %v408_v11  ;;  %v411_v15 = vadd.f32 %v408_v11, %v385_v1 }
  0x2a   : > { %v396_v17 = vsel %vm395_vm1, %v394_v13, 0.0 }
  0x2b   : > { %397 = vadd.xlane.f32.xlu0 %v396_v17  ;;  %v418_v19 = vsub.f32 %v411_v15, %v410_v14  ;;  %v429_v20 = vmax.f32 %v410_v14, %v416_v16  ;;  %v439_v21 = vmin.f32 %v410_v14, %v416_v16  ;;  %v428_v23 = vmin.f32 %v411_v15, %v417_v18 }
  0x2c   : > { %v438_v24 = vmax.f32 %v411_v15, %v417_v18 }
  0x2d   : > { %v420_v25 = vrot.slane %v418_v19, 1  ;;  %v430_v27 = vsub.f32 %v428_v23, %v429_v20 }
  0x2e   : > { %v440_v28 = vsub.f32 %v438_v24, %v439_v21 }
  0x2f   : > { %v422_v29 = vmul.f32 %v420_v25, %v418_v19  ;;  %v431_v31 = vmax.f32 %v430_v27, 0.0 }
  0x30   : > { %v442_v32 = vrot.slane %v440_v28, 1 }
  0x31   : > { %v433_v33 = vrot.slane %v431_v31, 1  ;;  %v436_v34 = vadd.f32 %v427_v30, %v422_v29 }
  0x32   : > { %v444_v35 = vmul.f32 %v442_v32, %v440_v28 }
  0x33   : > { %v435_v36 = vmul.f32 %v433_v33, %v431_v31 }
  0x34   : > { %v462_v37 = vmax.f32 %v444_v35, 1e-12 }
  0x35   : > { %v437_v38 = vsub.f32 %v436_v34, %v435_v36 }
  0x36   : > { %902 = vrcp.f32 %v462_v37  ;;  %v472_v42 = vand.u32 2147483647, %v462_v37  ;;  %v474_v43 = vand.u32 2147483648, %v462_v37  ;;  %vm468_vm3 = vweird.f32 %v462_v37 }
  0x37   : > { %v445_v39 = vmax.f32 %v437_v38, 1e-12  ;;  %v461_v54 = vsub.f32 %v444_v35, %v437_v38 }
  0x38   : > { %vm473_vm7 = vcmp.eq.f32.partialorder %v472_v42, 8.507059e+37  ;;  %v475_v49 = vor.u32 1.1754944e-38, %v474_v43 }
  0x39   : > { %904 = vrcp.f32 %v445_v39  ;;  %vm451_vm5 = vweird.f32 %v445_v39  ;;  %v457_v48 = vand.u32 2147483648, %v445_v39  ;;  %v455_v51 = vand.u32 2147483647, %v445_v39 }
  0x3b   : > { %v458_v56 = vor.u32 1.1754944e-38, %v457_v48  ;;  %vm456_vm10 = vcmp.eq.f32.partialorder %v455_v51, 8.507059e+37 }
  0x3c   : > { %v903_v40 = vpop.eup %902 }
  0x3d   : > { %v464_v41 = vmul.f32 %v903_v40, %v462_v37  ;;  %vm469_vm4 = vweird.f32 %v903_v40 }
  0x3e   : > { %vm470_vm6 = vmor %vm468_vm3, %vm469_vm4 }
  0x3f   : > { %v465_v44 = vsub.f32 1.0, %v464_v41  ;;  %v905_v45 = vpop.eup %904 }
  0x40   : > { %v447_v46 = vmul.f32 %v905_v45, %v445_v39  ;;  %vm452_vm8 = vweird.f32 %v905_v45 }
  0x41   : > { %v466_v47 = vmul.f32 %v903_v40, %v465_v44  ;;  %vm453_vm9 = vmor %vm451_vm5, %vm452_vm8 }
  0x42   : > { %v448_v50 = vsub.f32 1.0, %v447_v46 }
  0x43   : > { %v467_v52 = vadd.f32 %v903_v40, %v466_v47 }
  0x44   : > { %v449_v53 = vmul.f32 %v905_v45, %v448_v50 }
  0x45   : > { %v471_v55 = vsel %vm470_vm6, %v903_v40, %v467_v52 }
  0x46   : > { %v476_v57 = vsel %vm473_vm7, %v475_v49, %v471_v55  ;;  %v450_v58 = vadd.f32 %v905_v45, %v449_v53 }
  0x47   : > { %v477_v60 = vmul.f32 %v476_v57, %v461_v54 }
  0x48   : > { %v454_v59 = vsel %vm453_vm9, %v905_v45, %v450_v58 }
  0x49   : > { %v459_v61 = vsel %vm456_vm10, %v458_v56, %v454_v59 }
  0x4a   : > { %v460_v62 = vmul.f32 %v459_v61, %v435_v36 }
  0x4c   : > { %v478_v63 = vsub.f32 %v460_v62, %v477_v60 }
  0x4e   : > { %v479_v1 = vsel %vm388_vm0, %v478_v63, 0.0 }
  0x4f   : > { %v481_v2 = vsel %vm480_vm11, %v479_v1, 0.0 }
  0x50   : > { %482 = vadd.xlane.f32.xlu0 %v481_v2 }
  0x9e   : > { %v398_v4 = vpop.xlane.xlu0 %397 }
  0x9f   : > { %v399_v5 = vrot.slane %v398_v4, 4 }
  0xa1   : > { %v400_v6 = vadd.f32 %v399_v5, %v398_v4 }
  0xa3   : > { %v401_v7 = vrot.slane %v400_v6, 2 }
  0xa5   : > { %v402_v8 = vadd.f32 %v401_v7, %v400_v6 }
  0xa7   : > { %v403_v9 = vrot.slane %v402_v8, 1 }
  0xa9   : > { %v404_v10 = vadd.f32 %v403_v9, %v402_v8 }
  0xab   : > { %826 = vpush %v404_v10 }
  0xc3   : > { %v483_v11 = vpop.xlane.xlu0 %482 }
  0xc4   : > { %v486_v12 = vperm.slane %v483_v11, 0 }
  0xc6   : > { %487 = vst [vmem:[%s1221_s9] sm:$0xff] %v486_v12 }
  0xdc   : > { %s827_s0 = spop %826 }
  0xdd   : > { %v484_v13 = vstv %s827_s0 }
  0xde   : > { %485 = vst [vmem:[%s1207_s25] sm:$0xff] %v484_v13 }
  0xdf PF: > { %v488_v3 = vld [vmem:[%s1214_s16] sm:$0xff]  ;;  %vm490_vm12 = vcmask 39936   ;;  %v1086_v15 = vmov 0   ;;  %v503_v22 = vlaneseq  ;;  %v1087_v28 = vmov 1.0   ;;  %s1253_s12 = sshll.u32 %s1074_s30, 3  ;;  %s624_s24 = sshll.u32 %s1221_s9, 4  ;;  %s625_s24 = int_to_ptr.vmem [resolvable:$true] %s624_s24 }
  0xe0   : > { %v491_v14 = vsel %vm490_vm12, %v488_v3, -inf  ;;  %906 = vset.pattern.permute.xlu0 %v1086_v15  ;;  %907 = vset.pattern.permute.xlu2 %v1086_v15  ;;  %v489_v16 = vld [vmem:[%s1219_s13] sm:$0xff]  ;;  %vm523_vm0 = vcmask 7168   ;;  %s622_s20 = scalar_lea.hbm %s1369_s8, %s1253_s12  ;;  %s570_s21 = scalar_lea.sflag [#allocation8], %s1193_s19 }
  0xe1   : > { %492 = vmax.xlane.f32.xlu0 %v491_v14  ;;  %v504_v23 = vand.u32 127, %v503_v22  ;;  %vm515_vm14 = vcmp.eq.s32.totalorder %v489_v16, 4  ;;  %vm517_vm15 = vcmp.ge.s32.totalorder %v489_v16, 0  ;;  %s626_s16 = sshll.u32 %s622_s20, 4  ;;  %s932_s0 = scalar_lea.hbm %s1369_s8, 16  ;;  %s627_s16 = int_to_ptr.hbm [resolvable:$true] %s626_s16 }
  0xe2   : > { %v516_v29 = vsel %vm515_vm14, 0.1, %v1087_v28  ;;  %s926_s26 = sshra.s32 %s627_s16, 4  ;;  %s927_s26 = int_to_ptr.hbm [resolvable:$true] %s926_s26 }
  0xe3   : > { %v518_v30 = vsel %vm517_vm15, %v516_v29, 0.0  ;;  %s928_s14 = scalar_lea.hbm %s927_s26, 8  ;;  %p933_p2 = scmp.lt.s32.totalorder %s927_s26, %s1369_s8 }
  0xe4   : > { %v531_v31 = vsel %vm523_vm0, %v518_v30, 0.0  ;;  %p929_p13 = scmp.ne.s32.totalorder %s927_s26, %s928_s14  ;;  %p934_p3 = scmp.lt.s32.totalorder %s932_s0, %s928_s14 }
  0xe5   : > { %v532_v32 = vrot.slane %v531_v31, 4 }
  0xe6   : > { %p930_p0 = pnand %p929_p13, %p1175_p4  ;;  %p935_p5 = por %p934_p3, %p933_p2 }
  0xe7   : > { %v533_v33 = vadd.f32 %v532_v32, %v531_v31 }
  0xe8   : > { %p931_p1 = pneg %p930_p0 }
  0xe9   : > { %v534_v34 = vrot.slane %v533_v33, 2 }
  0xea   : > { %p936_p6 = pnand %p935_p5, %p931_p1 }
  0xeb   : > { %v535_v35 = vadd.f32 %v534_v34, %v533_v33 }
  0xf5   : > { %506 = vperm.xlu0 %906, %v489_v16  }
 0x154   : > { %v493_v17 = vpop.xlane.xlu0 %492 }
 0x155   : > { %v494_v18 = vsub.f32 %v488_v3, %v493_v17 }
 0x157   : > { %v495_v19 = vmul.f32 1.442695, %v494_v18 }
 0x159   : > { %908 = vpow2.f32 %v495_v19 }
 0x15f   : > { %v909_v20 = vpop.eup %908 }
 0x160   : > { %v497_v21 = vsel %vm490_vm12, %v909_v20, 0.0 }
 0x161   : > { %498 = vadd.xlane.f32.xlu1 %v497_v21 }
 0x167   : > { %v507_v24 = vpop.permute.xlu0 %506 }
 0x168   : > { %vm508_vm13 = vcmp.eq.s32.totalorder %v504_v23, %v507_v24 }
 0x169   : > { %v814_v25 = vsel %vm508_vm13, 1.0, %v1084_v0  ;;  %v536_v0 = vrot.slane %v535_v35, 1 }
 0x16a   : > { %v511_v26 = vmul.f32 %v814_v25, %v488_v3 }
 0x16b   : > { %v537_v36 = vadd.f32 %v536_v0, %v535_v35 }
 0x16c   : > { %v512_v27 = vsel %vm490_vm12, %v511_v26, 0.0 }
 0x16d   : > { %513 = vadd.xlane.f32.xlu1 %v512_v27  ;;  %549 = vperm.xlu2 %907, %v537_v36  }
 0x1d4   : > { %v499_v37 = vpop.xlane.xlu1 %498 }
 0x1d5   : > { %910 = vlog2.f32 %v499_v37 }
 0x1d6   : > { %939 = shalt.err (!%p936_p6)
}
 0x1d7   : > { %831 = dma.vmem_to_hbm [thread:$0]  (%p1175_p4), %s625_s24, 128, %s627_s16, %s570_s21   ;;  %vm519_vm1 = vcmp.gt.f32.partialorder %v518_v30, 0.0  ;;  %v546_v52 = vld [vmem:[%s1203_s23] sm:$0xff]  ;;  %v550_v53 = vpop.permute.xlu2 %549 }
 0x1d8   : > { %s594_s9 = scalar_lea.hbm %s1367_s6, %s1253_s12  ;;  %s608_s20 = scalar_lea.hbm %s1368_s7, %s1253_s12  ;;  %v552_v54 = vadd.f32 %v550_v53, %v546_v52 }
 0x1d9   : > { %s1385_s24 = sadd.s32 4294967295, %s1082_s10   ;;  %s596_s21 = sshll.u32 %s1203_s23, 4  ;;  %s597_s21 = int_to_ptr.vmem [resolvable:$true] %s596_s21 }
 0x1da   : > { %s1282_s16 = sand.u32 1, %s1385_s24   ;;  %s598_s26 = sshll.u32 %s594_s9, 4  ;;  %553 = vst [vmem:[%s1203_s23] sm:$0xff] %v552_v54  ;;  %s599_s26 = int_to_ptr.hbm [resolvable:$true] %s598_s26 }
 0x1db   : > { %v911_v38 = vpop.eup %910  ;;  %s610_s14 = sshll.u32 %s1207_s25, 4  ;;  %s1287_s30 = sshll.u32 %s608_s20, 4  ;;  %s1289_s14 = int_to_ptr.vmem [resolvable:$true] %s610_s14  ;;  %s613_s30 = int_to_ptr.hbm [resolvable:$true] %s1287_s30 }
 0x1dc   : > { %v501_v39 = vmul.f32 0.6931472, %v911_v38  ;;  %s560_s11 = scalar_lea.sflag [#allocation5], %s1282_s16  ;;  %s954_s0 = sshra.s32 %s599_s26, 4  ;;  %s955_s0 = int_to_ptr.hbm [resolvable:$true] %s954_s0 }
 0x1dd   : > { %s956_s1 = scalar_lea.hbm %s955_s0, 8  ;;  %s960_s9 = scalar_lea.hbm %s1367_s6, 16 }
 0x1de   : > { %v502_v40 = vadd.f32 %v501_v39, %v493_v17  ;;  %p957_p7 = scmp.ne.s32.totalorder %s955_s0, %s956_s1  ;;  %p961_p11 = scmp.lt.s32.totalorder %s955_s0, %s1367_s6 }
 0x1df   : > { %p962_p12 = scmp.lt.s32.totalorder %s960_s9, %s956_s1 }
 0x1e0   : > { %v514_v41 = vpop.xlane.xlu1 %513  ;;  %p958_p9 = pnand %p957_p7, %p1175_p4 }
 0x1e1   : > { %v520_v42 = vsub.f32 %v502_v40, %v514_v41  ;;  %p963_p13 = por %p962_p12, %p961_p11 }
 0x1e2   : > { %p959_p10 = pneg %p958_p9 }
 0x1e3   : > { %v521_v43 = vmul.f32 %v520_v42, %v518_v30 }
 0x1e4   : > { %p964_p0 = pnand %p963_p13, %p959_p10 }
 0x1e5   : > { %v522_v44 = vsel %vm519_vm1, %v521_v43, 0.0 }
 0x1e6   : > { %v524_v45 = vsel %vm523_vm0, %v522_v44, 0.0 }
 0x1e7   : > { %v525_v46 = vrot.slane %v524_v45, 4 }
 0x1e9   : > { %v526_v47 = vadd.f32 %v525_v46, %v524_v45 }
 0x1eb   : > { %v527_v48 = vrot.slane %v526_v47, 2 }
 0x1ed   : > { %v528_v49 = vadd.f32 %v527_v48, %v526_v47 }
 0x1ef   : > { %v529_v50 = vrot.slane %v528_v49, 1 }
 0x1f1   : > { %v530_v51 = vadd.f32 %v529_v50, %v528_v49 }
 0x1f3   : > { %541 = vperm.xlu2 %907, %v530_v51  }
 0x1f4   : > { %967 = shalt.err (!%p964_p0)
}
 0x1f5   : > { %829 = dma.vmem_to_hbm [thread:$0]  (%p1175_p4), %s597_s21, 128, %s599_s26, %s560_s11  }
 0x1f6   : > { %s982_s23 = sshra.s32 %s613_s30, 4  ;;  %s988_s0 = scalar_lea.hbm %s1368_s7, 16  ;;  %s983_s23 = int_to_ptr.hbm [resolvable:$true] %s982_s23 }
 0x1f7   : > { %s984_s20 = scalar_lea.hbm %s983_s23, 8  ;;  %p989_p5 = scmp.lt.s32.totalorder %s983_s23, %s1368_s7 }
 0x1f8   : > { %p985_p1 = scmp.ne.s32.totalorder %s983_s23, %s984_s20  ;;  %p990_p6 = scmp.lt.s32.totalorder %s988_s0, %s984_s20 }
 0x1fa   : > { %p986_p2 = pnand %p985_p1, %p1175_p4  ;;  %p991_p7 = por %p990_p6, %p989_p5 }
 0x1fc   : > { %p987_p3 = pneg %p986_p2 }
 0x1fe   : > { %p992_p9 = pnand %p991_p7, %p987_p3 }
 0x200   : > { %995 = shalt.err (!%p992_p9)
}
 0x201   : > { %830 = dma.vmem_to_hbm [thread:$0]  (%p1175_p4), %s1289_s14, 128, %s613_s30, %s560_s11   ;;  %v538_v55 = vld [vmem:[%s1199_s22] sm:$0xff] }
 0x202   : > { %s580_s2 = scalar_lea.hbm %s1366_s5, %s1253_s12  ;;  %s582_s9 = sshll.u32 %s1199_s22, 4  ;;  %s583_s9 = int_to_ptr.vmem [resolvable:$true] %s582_s9 }
 0x203   : > { %s584_s13 = sshll.u32 %s580_s2, 4  ;;  %s555_s18 = scalar_lea.sflag [#allocation3], %s1193_s19  ;;  %s585_s13 = int_to_ptr.hbm [resolvable:$true] %s584_s13 }
 0x204   : > { %s1010_s23 = sshra.s32 %s585_s13, 4  ;;  %s1016_s12 = scalar_lea.hbm %s1366_s5, 16  ;;  %s1011_s23 = int_to_ptr.hbm [resolvable:$true] %s1010_s23 }
 0x205   : > { %s1012_s20 = scalar_lea.hbm %s1011_s23, 8  ;;  %p1017_p13 = scmp.lt.s32.totalorder %s1011_s23, %s1366_s5 }
 0x206   : > { %p1013_p10 = scmp.ne.s32.totalorder %s1011_s23, %s1012_s20  ;;  %p1018_p0 = scmp.lt.s32.totalorder %s1016_s12, %s1012_s20 }
 0x208   : > { %p1014_p11 = pnand %p1013_p10, %p1175_p4  ;;  %p1019_p1 = por %p1018_p0, %p1017_p13 }
 0x20a   : > { %p1015_p12 = pneg %p1014_p11 }
 0x20c   : > { %p1020_p2 = pnand %p1019_p1, %p1015_p12 }
 0x24d   : > { %v542_v56 = vpop.permute.xlu2 %541 }
 0x24e   : > { %v544_v57 = vadd.f32 %v542_v56, %v538_v55 }
 0x250   : > { %545 = vst [vmem:[%s1199_s22] sm:$0xff] %v544_v57 }
 0x251   : > { %1023 = shalt.err (!%p1020_p2)
}
 0x252   : > { %828 = dma.vmem_to_hbm [thread:$0]  (%p1175_p4), %s583_s9, 128, %s585_s13, %s555_s18  }
 0x253 PF: > { %p849_p3 = scmp.ge.s32.totalorder %s1082_s10, 2  ;;  %s638_s19 = sand.u32 1, %s1062_s27  }
 0x254   : > { %s639_s22 = scalar_lea.sflag [#allocation3], %s638_s19 }
 0x255   : > { %p837_p5 = pnand %p849_p3, %p1184_p8 }
 0x257   : > { %p838_p6 = pneg %p837_p5 }
 0x259   : > { %1049 = dma.done.wait (%p838_p6), %s639_s22, 128  }
 0x25a   : > { %1051 = vsyncadd (%p838_p6), %s639_s22, 4294967168  ;;  %s1386_s16 = sadd.s32 4294967294, %s1082_s10  }
 0x25b   : > { %s648_s0 = sand.u32 1, %s1386_s16  }
 0x25c   : > { %s649_s1 = scalar_lea.sflag [#allocation5], %s648_s0 }
 0x25d   : > { %1053 = dma.done.wait (%p838_p6), %s649_s1, 256  }
 0x25e   : > { %1055 = vsyncadd (%p838_p6), %s649_s1, 4294967040  ;;  %s669_s15 = scalar_lea.sflag [#allocation8], %s638_s19 }
 0x25f   : > { %1057 = dma.done.wait (%p838_p6), %s669_s15, 128  }
 0x260   : > { %1059 = vsyncadd (%p838_p6), %s669_s15, 4294967168  ;;  %s28_s10 = sadd.s32 1, %s1082_s10   ;;  %s1387_s17 = sld [smem:[#allocation14_spill]] }
 0x261   : > { %p25_p4 = scmp.ge.s32.totalorder %s28_s10, 4   ;;  %s1388_s30 = sld [smem:[#allocation12_spill]] }
 0x262   : > { %s1389_s9 = sld [smem:[#allocation13_spill]]  ;;  %s1390_s27 = smov %s1066_s28 }
 0x263   : > { %s1391_s28 = smov %s1070_s29  ;;  %27 = sbr.rel (!%p25_p4) target bundleno = 12 (0xc), region = 135 }
 0x266   : > { %s1392_s29 = smov %s1387_s17 }
 0x268   :  { %675 = vsyncpa [#allocation3], 1 }
 0x269   :  { %677 = vsyncpa [#allocation3 + $0x1], 1 }
 0x26a   :  { %678 = vsyncpa [#allocation5], 1 }
 0x26b   :  { %680 = vsyncpa [#allocation5 + $0x1], 1 }
 0x26c   :  { %681 = vsyncpa [#allocation8], 1 }
 0x26d   :  { %683 = vsyncpa [#allocation8 + $0x1], 1 }

</bundles_post_ra>
